<compile_context>
chip_gen: v6e
topology: v6e:2x2x1
jax: 0.10.0
libtpu: 0.0.40
codegen_flags: <defaults>
</compile_context>

<pallas_src>
import functools
import math

import jax
import jax.numpy as jnp
from jax.experimental import pallas as pl
from jax.experimental.pallas import tpu as pltpu


# ----------------------------------------------------------------------------
# VMEM sizing helpers (generation-aware: ~128 MiB on v5e/v6e, ~64 MiB on v7x)
# ----------------------------------------------------------------------------
def _vmem_capacity_bytes():
    try:
        return int(pltpu.get_tpu_info().vmem_capacity_bytes)
    except Exception:
        return 64 * 1024 * 1024          # conservative fallback (v7x-sized)


def _pick_hw_tile(hw_pad, c, x_itemsize, has_skip, budget_bytes, min_hw_tiles=1):
    """Largest lane tile T (multiple of 128, <= hw_pad) whose double-buffered
    x(+skip)+out blocks fit in budget_bytes.  min_hw_tiles>1 forces at least that
    many spatial tiles (megacore split when the batch axis alone is too small)."""
    per_lane = 2 * (c * x_itemsize + (3 * 2 if has_skip else 0) + 3 * 4)
    cap = max(128, (budget_bytes // per_lane) // 128 * 128)
    t = min(cap, hw_pad)
    if min_hw_tiles > 1 and hw_pad >= min_hw_tiles * 128:
        t = min(t, (hw_pad // min_hw_tiles) // 128 * 128)
    return max(t, 128)


# ----------------------------------------------------------------------------
# EqualLinear as a Pallas kernel (the spec module)
# ----------------------------------------------------------------------------
def _equal_linear_kernel(x_ref, wt_ref, b_ref, o_ref, *, fused_lrelu):
    # x_ref: (B, in_dim)  wt_ref: (in_dim, out_dim) already scaled  b_ref: (1, out_dim)
    y = jnp.dot(x_ref[...], wt_ref[...],
                preferred_element_type=jnp.float32,
                precision=jax.lax.Precision.HIGHEST)
    y = y + b_ref[...]
    if fused_lrelu:
        # fused_leaky_relu: leaky_relu(x + b, 0.2) * sqrt(2)
        y = jnp.where(y >= 0.0, y, 0.2 * y) * math.sqrt(2.0)
    o_ref[...] = y


def equal_linear(x, weight, bias=None, *, lr_mul=1.0, activation=None):
    """EqualLinear forward. x:(B,in_dim), weight:(out_dim,in_dim), bias:(out_dim,)."""
    B, in_dim = x.shape
    out_dim = weight.shape[0]
    scale = (1.0 / math.sqrt(in_dim)) * lr_mul
    wt = (weight.astype(jnp.float32) * scale).T                       # (in_dim, out_dim)
    if bias is None:
        b = jnp.zeros((1, out_dim), jnp.float32)
    else:
        b = (bias.astype(jnp.float32) * lr_mul).reshape(1, out_dim)

    kernel = functools.partial(_equal_linear_kernel,
                               fused_lrelu=(activation == "fused_lrelu"))
    return pl.pallas_call(
        kernel,
        out_shape=jax.ShapeDtypeStruct((B, out_dim), jnp.float32),
        grid=(1,),
        in_specs=[
            pl.BlockSpec((B, in_dim), lambda i: (0, 0)),
            pl.BlockSpec((in_dim, out_dim), lambda i: (0, 0)),
            pl.BlockSpec((1, out_dim), lambda i: (0, 0)),
        ],
        out_specs=pl.BlockSpec((B, out_dim), lambda i: (0, 0)),
        compiler_params=pltpu.CompilerParams(dimension_semantics=("arbitrary",)),
    )(x.astype(jnp.float32), wt, b)


# ----------------------------------------------------------------------------
# Fused modulation: EqualLinear + conv_scale + style outer product in ONE launch,
# emitting the resident (B, 3, C) bf16 weight for the spatial kernel.
# ----------------------------------------------------------------------------
def _modulation_kernel(style_ref, wmodT_ref, bmod_ref, wconv_ref, weff_ref):
    # style:(B,S) wmodT:(S,C) bmod:(1,C) wconv:(3,C, pre-scaled) -> weff:(B,3,C) bf16
    s = jnp.dot(style_ref[...], wmodT_ref[...],
                preferred_element_type=jnp.float32,
                precision=jax.lax.Precision.HIGHEST) + bmod_ref[...]       # (B, C)
    weff = wconv_ref[...][None, :, :] * s[:, None, :]                      # (B, 3, C)
    weff_ref[...] = weff.astype(weff_ref.dtype)


def _modulation_weff(style, w_mod, b_mod, w_conv, conv_scale):
    B, S = style.shape
    C = w_mod.shape[0]
    wt = (w_mod.astype(jnp.float32) * (1.0 / math.sqrt(S))).T              # (S, C)
    b = b_mod.astype(jnp.float32).reshape(1, C)
    wc = w_conv.astype(jnp.float32) * conv_scale                           # (3, C)
    return pl.pallas_call(
        _modulation_kernel,
        out_shape=jax.ShapeDtypeStruct((B, 3, C), jnp.bfloat16),
        grid=(1,),
        in_specs=[
            pl.BlockSpec((B, S), lambda i: (0, 0)),
            pl.BlockSpec((S, C), lambda i: (0, 0)),
            pl.BlockSpec((1, C), lambda i: (0, 0)),
            pl.BlockSpec((3, C), lambda i: (0, 0)),
        ],
        out_specs=pl.BlockSpec((B, 3, C), lambda i: (0, 0, 0)),
        compiler_params=pltpu.CompilerParams(dimension_semantics=("arbitrary",)),
    )(style.astype(jnp.float32), wt, b, wc)


# ----------------------------------------------------------------------------
# Modulated 1x1 conv + bias (+ skip) kernels, tiled over the spatial (lane) axis
# ----------------------------------------------------------------------------
def _rgb_conv_kernel(weff_ref, bias_ref, x_ref, o_ref):
    # weff:(1,3,C) bf16  bias:(3,1) f32  x:(1,C,T) native dtype  o:(1,3,T) f32
    x_t = x_ref[0].astype(jnp.bfloat16)                                    # in-kernel cast (VPU slack)
    acc = jnp.dot(weff_ref[0], x_t, preferred_element_type=jnp.float32)    # (3, T) f32 accum
    o_ref[0] = acc + bias_ref[...]


def _rgb_conv_skip_kernel(weff_ref, bias_ref, x_ref, skip_ref, o_ref):
    x_t = x_ref[0].astype(jnp.bfloat16)
    acc = jnp.dot(weff_ref[0], x_t, preferred_element_type=jnp.float32)
    o_ref[0] = acc + bias_ref[...] + skip_ref[0].astype(jnp.float32)


def _modulated_rgb_conv(x_b, w_eff, bias, skip_b=None):
    # x_b:(B,C,HW) native  w_eff:(B,3,C) bf16  bias:(3,1) f32  skip_b:(B,3,HW) bf16 or None
    B, C, HW = x_b.shape
    has_skip = skip_b is not None

    vmem_cap = _vmem_capacity_bytes()
    vmem_limit = int(vmem_cap * 0.75)         # ~96 MiB on v5e/v6e, ~48 MiB on v7x
    budget = int(vmem_limit * 0.8)            # headroom for weff/bias blocks + semaphores

    hw_pad = pl.cdiv(HW, 128) * 128           # keep lane-dense tiles; tiny pad for odd sizes
    T = _pick_hw_tile(hw_pad, C, x_b.dtype.itemsize, has_skip, budget,
                      min_hw_tiles=2 if B < 2 else 1)
    if hw_pad != HW:
        x_b = jnp.pad(x_b, ((0, 0), (0, 0), (0, hw_pad - HW)))
        if has_skip:
            skip_b = jnp.pad(skip_b, ((0, 0), (0, 0), (0, hw_pad - HW)))

    grid = (B, pl.cdiv(hw_pad, T))            # partial last tile -> masked stores (no OOM fallback)
    cp = pltpu.CompilerParams(
        dimension_semantics=("parallel", "parallel"),   # B x HW-tiles sharded across TCs
        vmem_limit_bytes=vmem_limit)

    weff_spec = pl.BlockSpec((1, 3, C), lambda b, t: (b, 0, 0))
    bias_spec = pl.BlockSpec((3, 1), lambda b, t: (0, 0))
    x_spec = pl.BlockSpec((1, C, T), lambda b, t: (b, 0, t))
    out_spec = pl.BlockSpec((1, 3, T), lambda b, t: (b, 0, t))
    out_shape = jax.ShapeDtypeStruct((B, 3, hw_pad), jnp.float32)

    if not has_skip:
        out = pl.pallas_call(
            _rgb_conv_kernel, out_shape=out_shape, grid=grid,
            in_specs=[weff_spec, bias_spec, x_spec],
            out_specs=out_spec, compiler_params=cp,
        )(w_eff, bias, x_b)
    else:
        skip_spec = pl.BlockSpec((1, 3, T), lambda b, t: (b, 0, t))
        out = pl.pallas_call(
            _rgb_conv_skip_kernel, out_shape=out_shape, grid=grid,
            in_specs=[weff_spec, bias_spec, x_spec, skip_spec],
            out_specs=out_spec, compiler_params=cp,
        )(w_eff, bias, x_b, skip_b)

    return out[:, :, :HW] if hw_pad != HW else out


# ----------------------------------------------------------------------------
# Blur-upsample glue for the skip path (upfirdn2d, up=2, kernel=[1,3,3,1]).
# Runs in the caller's dtype (bf16 in the fast path) so no extra cast pass.
# TODO(synk): fuse the separable [1,3,3,1] up-2 filter into the spatial Pallas kernel (stream half-res skip + halo) to cut skip HBM traffic ~4x more.
# TODO(synk): padding/flip convention validated only against the in-script reference, not directly against torch's upfirdn2d.
# ----------------------------------------------------------------------------
def _make_blur_kernel(k):
    k = jnp.asarray(k, jnp.float32)
    k2d = k[None, :] * k[:, None]
    return k2d / jnp.sum(k2d)


def upsample2x(x, blur_kernel=(1, 3, 3, 1), factor=2):
    # x: (B, C, H, W) -> (B, C, 2H, 2W), same dtype as x
    k = _make_blur_kernel(blur_kernel) * (factor ** 2)
    kh = k.shape[0]
    p = kh - factor
    pad0 = (p + 1) // 2 + factor - 1
    pad1 = p // 2
    C = x.shape[1]
    w = jnp.flip(k, (0, 1))[None, None, :, :].astype(x.dtype)
    w = jnp.tile(w, (C, 1, 1, 1))
    return jax.lax.conv_general_dilated(
        x, w, window_strides=(1, 1),
        padding=((pad0, pad1 + 1), (pad0, pad1 + 1)),
        lhs_dilation=(factor, factor),
        dimension_numbers=("NCHW", "OIHW", "NCHW"),
        feature_group_count=C)


# ----------------------------------------------------------------------------
# Full forward wrapper
# ----------------------------------------------------------------------------
def torgb_forward(x, style, params, skip=None):
    B, C, H, W = x.shape
    HW = H * W

    conv_scale = 1.0 / math.sqrt(C * 1 * 1)
    # EqualLinear modulation + conv scale + style outer product fused into one launch.
    w_eff = _modulation_weff(style, params["w_mod"], params["b_mod"],
                             params["w_conv"], conv_scale)                # (B,3,C) bf16
    bias = params["bias"].reshape(3, 1).astype(jnp.float32)

    # Stream x in its NATIVE dtype (no wrapper-side cast = no extra HBM pass).
    x_b = x.reshape(B, C, HW)

    if skip is not None:
        # bf16 end-to-end upsample: the result is streamed directly by the kernel.
        skip_b = upsample2x(skip.astype(jnp.bfloat16)).reshape(B, 3, HW)
    else:
        skip_b = None   # no-skip path streams no zero tensor at all

    out = _modulated_rgb_conv(x_b, w_eff, bias, skip_b)
    return out.reshape(B, 3, H, W)


# ----------------------------------------------------------------------------
# Pure-JAX f32 reference (mirrors the PyTorch module semantics)
# ----------------------------------------------------------------------------
def torgb_ref(x, style, params, skip=None):
    B, C, H, W = x.shape
    S = style.shape[-1]
    s = style @ (params["w_mod"] * (1.0 / math.sqrt(S))).T + params["b_mod"]
    w_eff = (1.0 / math.sqrt(C)) * params["w_conv"][None] * s[:, None, :]
    out = jnp.einsum("boc,bchw->bohw", w_eff, x) + params["bias"].reshape(1, 3, 1, 1)
    if skip is not None:
        out = out + upsample2x(skip)
    return out


if __name__ == "__main__":
    key = jax.random.PRNGKey(0)
    k1, k2, k3, k4, k5 = jax.random.split(key, 5)

    B, C, S, H, W = 2, 8, 16, 16, 16      # batch, in_channel, style_dim, spatial

    x = jax.random.normal(k1, (B, C, H, W), jnp.float32)
    style = jax.random.normal(k2, (B, S), jnp.float32)
    skip = jax.random.normal(k3, (B, 3, H // 2, W // 2), jnp.float32)

    params = {
        "w_conv": jax.random.normal(k4, (3, C), jnp.float32),   # ToRGB conv weight (3,C,1,1)
        "w_mod": jax.random.normal(k5, (C, S), jnp.float32),    # EqualLinear weight
        "b_mod": jnp.ones((C,), jnp.float32),                   # bias_init=1
        "bias": jnp.zeros((3,), jnp.float32),                   # ToRGB bias
    }

    # --- EqualLinear kernel on its own (precision=HIGHEST -> tight tolerance) ---
    el_out = jax.block_until_ready(equal_linear(style, params["w_mod"], params["b_mod"]))
    el_ref = style @ (params["w_mod"] * (1.0 / math.sqrt(S))).T + params["b_mod"]
    assert el_out.shape == (B, C)
    assert jnp.allclose(el_out, el_ref, atol=1e-3, rtol=1e-3), "EqualLinear mismatch"

    # --- full forward with skip (bf16-streamed weights/skip -> loose tolerance) ---
    out = jax.block_until_ready(torgb_forward(x, style, params, skip=skip))
    ref = torgb_ref(x, style, params, skip=skip)
    assert out.shape == (B, 3, H, W)
    assert jnp.allclose(out, ref, atol=1e-1, rtol=1e-1), "mismatch (skip path)"

    # --- without skip (exercises the specialized no-skip kernel) ---
    out2 = jax.block_until_ready(torgb_forward(x, style, params, skip=None))
    ref2 = torgb_ref(x, style, params, skip=None)
    assert jnp.allclose(out2, ref2, atol=1e-1, rtol=1e-1), "mismatch (no-skip path)"

    print("KERNEL_OK")
</pallas_src>

<mosaic_0001>
module attributes {stable_mosaic.version = 11 : i64} {
  func.func @_equal_linear_kernel(%arg0: i32, %arg1: memref<2x16xf32, #tpu.memory_space<vmem>>, %arg2: memref<16x8xf32, #tpu.memory_space<vmem>>, %arg3: memref<1x8xf32, #tpu.memory_space<vmem>>, %arg4: memref<2x8xf32, #tpu.memory_space<vmem>>) attributes {dimension_semantics = [#tpu.dimension_semantics<arbitrary>], iteration_bounds = array<i64: 1>, scalar_prefetch = 0 : i64, scratch_operands = 0 : i64, tpu.core_type = #tpu.core_type<tc>, window_params = [{pipeline_mode = #tpu.pipeline_mode<synchronous>, transform_indices = @transform_0, window_bounds = array<i64: 2, 16>}, {pipeline_mode = #tpu.pipeline_mode<synchronous>, transform_indices = @transform_1, window_bounds = array<i64: 16, 8>}, {pipeline_mode = #tpu.pipeline_mode<synchronous>, transform_indices = @transform_2, window_bounds = array<i64: 1, 8>}, {pipeline_mode = #tpu.pipeline_mode<synchronous>, transform_indices = @transform_3, window_bounds = array<i64: 2, 8>}]} {
    %c0 = arith.constant 0 : index
    %c0_0 = arith.constant 0 : index
    %0 = vector.load %arg1[%c0, %c0_0] : memref<2x16xf32, #tpu.memory_space<vmem>>, vector<2x16xf32>
    %c0_1 = arith.constant 0 : index
    %c0_2 = arith.constant 0 : index
    %1 = vector.load %arg2[%c0_1, %c0_2] : memref<16x8xf32, #tpu.memory_space<vmem>>, vector<16x8xf32>
    %cst = arith.constant dense<0.000000e+00> : vector<2x8xf32>
    %2 = tpu.matmul %0, %1, %cst {dimension_numbers = #tpu.dot_dimension_numbers<[1], [0], [0], [1], [0, 0, 1, 1], [], []>, precision = #tpu.contract_precision<fp32>} : vector<2x16xf32>, vector<16x8xf32>, vector<2x8xf32> -> vector<2x8xf32>
    %c0_3 = arith.constant 0 : index
    %c0_4 = arith.constant 0 : index
    %3 = vector.load %arg3[%c0_3, %c0_4] : memref<1x8xf32, #tpu.memory_space<vmem>>, vector<1x8xf32>
    %4 = vector.broadcast %3 : vector<1x8xf32> to vector<2x8xf32>
    %5 = arith.addf %2, %4 : vector<2x8xf32>
    %c0_5 = arith.constant 0 : index
    %c0_6 = arith.constant 0 : index
    %6 = vector.load %arg4[%c0_5, %c0_6] : memref<2x8xf32, #tpu.memory_space<vmem>>, vector<2x8xf32>
    tpu.vector_store %arg4[%c0_5, %c0_6], %5 {strides = array<i32>} : memref<2x8xf32, #tpu.memory_space<vmem>>, vector<2x8xf32>,
    return
  }
  func.func @transform_0(%arg0: i32) -> (i32, i32) {
    %c0_i32 = arith.constant 0 : i32
    %c0_i32_0 = arith.constant 0 : i32
    %c0_i32_1 = arith.constant 0 : i32
    return %c0_i32, %c0_i32_0 : i32, i32
  }
  func.func @transform_1(%arg0: i32) -> (i32, i32) {
    %c0_i32 = arith.constant 0 : i32
    %c0_i32_0 = arith.constant 0 : i32
    %c0_i32_1 = arith.constant 0 : i32
    return %c0_i32, %c0_i32_0 : i32, i32
  }
  func.func @transform_2(%arg0: i32) -> (i32, i32) {
    %c0_i32 = arith.constant 0 : i32
    %c0_i32_0 = arith.constant 0 : i32
    %c0_i32_1 = arith.constant 0 : i32
    return %c0_i32, %c0_i32_0 : i32, i32
  }
  func.func @transform_3(%arg0: i32) -> (i32, i32) {
    %c0_i32 = arith.constant 0 : i32
    %c0_i32_0 = arith.constant 0 : i32
    %c0_i32_1 = arith.constant 0 : i32
    return %c0_i32, %c0_i32_0 : i32, i32
  }
}

</mosaic_0001>

<bundles_post_ra>
// kernel: tpu_custom_call.1
= control target key start
LH: loop header
LB: loop body
LE: loop exit
PB: predicated region body
PF: predicated region fallthrough
CT: control target
= control target key end

     0   :  { %v590_v3 = vmov 0.0   ;;  %vm25_vm0 = vcmask 130048   ;;  %vm591_vm1 = vmmov 0   ;;  %s634_s0 = inlined_call_operand.vmem [shape: f32[2,16], index: 0, kind: input, shape index: {}]   ;;  %s635_s1 = inlined_call_operand.vmem [shape: f32[16,8], index: 1, kind: input, shape index: {}]   ;;  %s636_s2 = inlined_call_operand.vmem [shape: f32[1,8], index: 2, kind: input, shape index: {}]   ;;  %s637_s3 = inlined_call_operand.hbm [shape: f32[2,8], index: 3, kind: output, shape index: {}]  }
   0x1   :  { %v17_v0 = vld [vmem:[%s635_s1 + $0x8] sm:$0xff]  ;;  %v16_v1 = vld [vmem:[%s635_s1] sm:$0xff]  ;;  %523 = vmatprep.subr.mxu0 %v590_v3  ;;  %530 = vmatprep.subr.mxu1 %v590_v3 }
   0x2   :  { %v15_v2 = vld [vmem:[%s634_s0] sm:$0x3]  ;;  %v58_v4 = vand.u32 4294901760, %v17_v0  ;;  %v61_v5 = vand.u32 4294901760, %v16_v1  ;;  %527 = vmatprep.mubr.msk.f32.mxu0 %vm591_vm1, %v590_v3  ;;  %534 = vmatprep.mubr.msk.f32.mxu1 %vm591_vm1, %v590_v3 }
   0x3   :  { %v27_v6 = vsel %vm25_vm0, %v15_v2, 0 }
   0x4   :  { %8 = vsyncpa [#allocation3], 0  ;;  %524 = vmatpush3.msra.mxu0 %v58_v4  ;;  %v136_v7 = vsub.f32 %v17_v0, %v58_v4  ;;  %v96_v8 = vand.u32 4294901760, %v27_v6  ;;  %v143_v9 = vsub.f32 %v16_v1, %v61_v5  ;;  %v504_v20 = vld [vmem:[%s636_s2] ss:$0 sm:$0xff]  ;;  %s592_s18 = smov [#allocation2]  }
   0x5   :  { %525 = vmatprep.subr.mxu0 %v590_v3  ;;  %s496_s19 = sshll.u32 %s592_s18, 4  ;;  %vm488_vm2 = vcmask 58368   ;;  %s497_s19 = int_to_ptr.vmem [resolvable:$true] %s496_s19 }
   0x6   :  { %526 = vmatpush3.msra.mxu0 %v61_v5  ;;  %v137_v10 = vand.u32 4294901760, %v136_v7  ;;  %v97_v11 = vsub.f32 %v27_v6, %v96_v8  ;;  %v144_v12 = vand.u32 4294901760, %v143_v9  ;;  %s568_s2 = scalar_lea.vmem %s497_s19, 32  ;;  %p573_p1 = scmp.lt.s32.totalorder %s497_s19, %s497_s19 }
   0x7   :  { %537 = vmatprep.subr.mxu0 %v590_v3  ;;  %p569_p0 = scmp.ne.s32.totalorder %s497_s19, %s568_s2  ;;  %p574_p2 = scmp.lt.s32.totalorder %s568_s2, %s568_s2 }
   0x8   :  { %v138_v13 = vsub.f32 %v136_v7, %v137_v10  ;;  %v98_v14 = vand.u32 4294901760, %v97_v11  ;;  %v145_v15 = vsub.f32 %v143_v9, %v144_v12 }
   0x9   :  { %p575_p3 = por %p574_p2, %p573_p1 }
   0xa   :  { %v139_v16 = vand.u32 4294901760, %v138_v13  ;;  %v99_v17 = vsub.f32 %v97_v11, %v98_v14  ;;  %v146_v18 = vand.u32 4294901760, %v145_v15 }
   0xb   :  { %p576_p4 = pnand %p575_p3, %p569_p0 }
   0xc   :  { %531 = vmatpush3.msra.mxu1 %v139_v16  ;;  %v100_v19 = vand.u32 4294901760, %v99_v17 }
   0xd   :  { %532 = vmatprep.subr.mxu1 %v590_v3 }
   0xe   :  { %528 = vmatmul.mubr.f32.vlgmr.msra.gmra.mxu0 %v100_v19  ;;  %533 = vmatpush3.msra.mxu1 %v146_v18 }
   0xf   :  { %538 = vmatpush3.msra.mxu0 %v136_v7  ;;  %535 = vmatmul.mubr.f32.vlgmr.msra.gmra.mxu1 %v96_v8 }
  0x10   :  { %539 = vmatprep.subr.mxu0 %v590_v3  ;;  %544 = vmatprep.subr.mxu1 %v590_v3 }
  0x11   :  { %540 = vmatpush3.msra.mxu0 %v143_v9  ;;  %541 = vmatprep.mubr.msk.f32.mxu0 %vm591_vm1, %v590_v3 }
  0x12   :  { %545 = vmatpush3.msra.mxu1 %v58_v4  ;;  %542 = vmatmul.mubr.f32.vlgmr.msra.gmra.mxu0 %v97_v11 }
  0x13   :  { %546 = vmatprep.subr.mxu1 %v590_v3  ;;  %551 = vmatprep.subr.mxu0 %v590_v3 }
  0x14   :  { %547 = vmatpush3.msra.mxu1 %v61_v5  ;;  %548 = vmatprep.mubr.msk.f32.mxu1 %vm591_vm1, %v590_v3 }
  0x15   :  { %552 = vmatpush3.msra.mxu0 %v137_v10  ;;  %549 = vmatmul.mubr.f32.vlgmr.msra.gmra.mxu1 %v98_v14 }
  0x16   :  { %553 = vmatprep.subr.mxu0 %v590_v3  ;;  %558 = vmatprep.subr.mxu1 %v590_v3 }
  0x17   :  { %554 = vmatpush3.msra.mxu0 %v144_v12  ;;  %555 = vmatprep.mubr.msk.f32.mxu0 %vm591_vm1, %v590_v3 }
  0x18   :  { %559 = vmatpush3.msra.mxu1 %v58_v4  ;;  %556 = vmatmul.mubr.f32.vlgmr.msra.gmra.mxu0 %v96_v8 }
  0x19   :  { %560 = vmatprep.subr.mxu1 %v590_v3  ;;  %562 = vmatprep.mubr.msk.f32.mxu1 %vm591_vm1, %v590_v3 }
  0x1a   :  { %561 = vmatpush3.msra.mxu1 %v61_v5 }
  0x1b   :  { %563 = vmatmul.mubr.f32.vlgmr.msra.gmra.mxu1 %v96_v8 }
  0xce   :  { %v102_v21 = vpop.f32.mrf.mxu0 }
  0xcf   :  { %v103_v22 = vadd.f32 %v504_v20, %v102_v21  ;;  %v183_v23 = vpop.f32.mrf.mxu1 }
  0xd0   :  { %v529_v24 = vpop.f32.mrf.mxu0 }
  0xd1   :  { %v184_v25 = vadd.f32 %v183_v23, %v103_v22  ;;  %v536_v26 = vpop.f32.mrf.mxu1 }
  0xd2   :  { %v259_v27 = vpop.f32.mrf.mxu0 }
  0xd3   :  { %v260_v28 = vadd.f32 %v259_v27, %v184_v25 }
  0xd4   :  { %v543_v29 = vpop.f32.mrf.mxu0 }
  0xd5   :  { %v334_v30 = vpop.f32.mrf.mxu1 }
  0xd6   :  { %v335_v31 = vadd.f32 %v334_v30, %v260_v28 }
  0xd7   :  { %v550_v32 = vpop.f32.mrf.mxu1 }
  0xd8   :  { %v411_v33 = vpop.f32.mrf.mxu0 }
  0xd9   :  { %v412_v34 = vadd.f32 %v411_v33, %v335_v31 }
  0xda   :  { %v557_v35 = vpop.f32.mrf.mxu0 }
  0xdb   :  { %v484_v36 = vpop.f32.mrf.mxu1 }
  0xdc   :  { %v485_v37 = vadd.f32 %v484_v36, %v412_v34 }
  0xdd   :  { %v564_v38 = vpop.f32.mrf.mxu1 }
  0xde   :  { %489 = vst.msk [vmem:[#allocation2] sm:$0x3] %vm488_vm2, %v485_v37 }
  0xdf   :  { %579 = shalt.err (!%p576_p4)
}
  0xe0   :  { %499 = dma.vmem_to_hbm [thread:$0]  %s497_s19, 32, %s637_s3, [#allocation3]  }
  0xe1   :  { %588 = dma.done.wait [#allocation3], 32  }
  0xe2   :  { %589 = vsyncadd [#allocation3], 4294967264 }
  0xe3   :  { %503 = vsyncpa [#allocation3], 1 }

</bundles_post_ra>
